<compile_context>
chip_gen: v7x
topology: tpu7x:2x2x1
jax: 0.10.0
libtpu: 0.0.40
codegen_flags: <defaults>
</compile_context>

<pallas_src>
import functools

import jax
import jax.numpy as jnp
from jax.experimental import pallas as pl
from jax.experimental.pallas import tpu as pltpu

EPS = 1e-8


def _round_up(x: int, m: int) -> int:
    return ((x + m - 1) // m) * m


def _tpu_vmem_capacity_bytes() -> int:
    """Physical VMEM per TensorCore; conservative 64 MiB fallback (v7x)."""
    try:
        info = pltpu.get_tpu_info()
        return int(getattr(info, "vmem_capacity_bytes", 64 * 1024 * 1024))
    except Exception:
        return 64 * 1024 * 1024


def _modconv_kernel(x_ref, wm_ref, o_ref, stk_ref, *,
                    k: int, c: int, w_stride: int, tp: int, win: int):
    # x_ref  : (1, C, Lx)        flattened, spatially padded input (compute dtype)
    # wm_ref : (1, O_pad, KK*C)  per-batch modulated + demodulated weights
    # o_ref  : (1, O_pad, TP)    output tile (lane-dense, TP % 128 == 0)
    # stk_ref: (KK*C, TP)        stacked shifted-window scratch

    # Aligned window covering this tile plus the conv halo.
    p0 = pl.multiple_of(pl.program_id(1) * tp, 128)
    xwin = x_ref[0, :, pl.ds(p0, win)]                      # (C, WIN)

    # Stack all k*k shifted taps so the whole conv is a single
    # (O_pad, KK*C) x (KK*C, TP) MXU matmul.
    for ki in range(k):
        for kj in range(k):
            s = ki * w_stride + kj                          # static shift
            tap = ki * k + kj
            xs = xwin if s == 0 else pltpu.roll(xwin, shift=win - s, axis=1)
            stk_ref[tap * c:(tap + 1) * c, :] = xs[:, :tp]
    # TODO(synk): once unaligned dynamic lane slices are verified on all
    # target generations, read x_ref[0, :, pl.ds(p0 + s, tp)] per tap to drop
    # the halo-proportional XLU roll work entirely.

    o_ref[0] = jnp.dot(wm_ref[0], stk_ref[...],
                       preferred_element_type=jnp.float32).astype(o_ref.dtype)


def mod_conv2d(x, y, weight, *, demod: bool = True,
               compute_dtype=jnp.bfloat16, out_dtype=None,
               tile_target: int | None = None):
    """Pallas implementation of ModConv2D.forward.

    x: (B, C, H, W) f32, y: (B, C) f32, weight: (O, C, k, k) f32.
    Returns (B, O, H, W) in `out_dtype` (default: x.dtype).
    """
    B, C, H, W = x.shape
    O, Ci, k, k2 = weight.shape
    assert Ci == C and k2 == k
    out_dtype = x.dtype if out_dtype is None else out_dtype
    pad = (k - 1) // 2
    H_pad, W_pad = H + 2 * pad, W + 2 * pad
    KK = k * k
    KKC = KK * C

    # --- generation-aware tiling --------------------------------------------
    vmem_cap = _tpu_vmem_capacity_bytes()
    if tile_target is None:
        # 128-MiB chips (v5e/v6e): bigger tiles; 64-MiB v7x: keep 512.
        tile_target = 1024 if vmem_cap >= 96 * 1024 * 1024 else 512
    tile_target = _round_up(max(int(tile_target), 128), 128)

    L_out = H * W_pad                              # flat positions we compute
    TP = max(128, min(tile_target, _round_up(L_out, 128)))
    assert TP % 128 == 0, TP                       # lane-dense tiles required
    num_tiles = pl.cdiv(L_out, TP)
    L_out_pad = num_tiles * TP
    s_max = (k - 1) * W_pad + (k - 1)              # largest in-kernel shift
    WIN = _round_up(TP + s_max, 128)               # tile + halo window
    Lx = (num_tiles - 1) * TP + WIN                # flat x length incl. halo
    O_pad = _round_up(O, 16)                       # sublane pad only (not 128)

    # --- host-side layout prep (no k^2 blowup) ------------------------------
    x_sp = jnp.pad(x, ((0, 0), (0, 0), (pad, pad), (pad, pad)))
    x_flat = x_sp.reshape(B, C, H_pad * W_pad)
    x_flat = jnp.pad(x_flat, ((0, 0), (0, 0), (0, Lx - H_pad * W_pad)))
    x_flat = x_flat.astype(compute_dtype)

    # Modulation + demodulation in f32, per batch element; layout matches the
    # in-kernel stacked-window scratch: (B, O_pad, KK*C) with (ki, kj, c) order.
    wm = (weight.astype(jnp.float32)[None]
          * (y.astype(jnp.float32)[:, None, :, None, None] + 1.0))   # (B,O,C,k,k)
    if demod:
        d = jax.lax.rsqrt(jnp.sum(wm * wm, axis=(2, 3, 4), keepdims=True) + EPS)
        wm = wm * d
    wm = jnp.transpose(wm, (0, 1, 3, 4, 2)).reshape(B, O, KKC)
    wm = jnp.pad(wm, ((0, 0), (0, O_pad - O), (0, 0))).astype(compute_dtype)

    kernel = functools.partial(_modconv_kernel, k=k, c=C, w_stride=W_pad,
                               tp=TP, win=WIN)

    # Exact VMEM estimate: double-buffer only grid-varying blocks.
    cbytes = jnp.dtype(compute_dtype).itemsize
    obytes = jnp.dtype(out_dtype).itemsize
    est = (2 * C * Lx * cbytes           # per-batch x slab (b-varying)
           + 2 * O_pad * KKC * cbytes    # per-batch weights (b-varying)
           + 2 * O_pad * TP * obytes     # output tile (b,t-varying)
           + KKC * TP * cbytes)          # stacked-window scratch (single)
    budget = int(0.85 * vmem_cap)
    vmem_limit = int(min(budget,
                         max(32 * 1024 * 1024,
                             int(1.25 * est) + 4 * 1024 * 1024)))

    out_flat = pl.pallas_call(
        kernel,
        out_shape=jax.ShapeDtypeStruct((B, O_pad, L_out_pad), out_dtype),
        grid_spec=pltpu.PrefetchScalarGridSpec(
            num_scalar_prefetch=0,
            grid=(B, num_tiles),
            in_specs=[
                # per-batch flat x slab, resident across spatial tiles
                pl.BlockSpec((1, C, Lx), lambda b, t: (b, 0, 0)),
                # per-batch modulated weights (prefetched like any block)
                pl.BlockSpec((1, O_pad, KKC), lambda b, t: (b, 0, 0)),
            ],
            out_specs=pl.BlockSpec((1, O_pad, TP), lambda b, t: (b, 0, t)),
            scratch_shapes=[pltpu.VMEM((KKC, TP), compute_dtype)],
        ),
        compiler_params=pltpu.CompilerParams(
            # No cross-tile state (wm precomputed host-side), so both axes are
            # safe to shard across TensorCores (v7x dual-TC, B==1 included).
            dimension_semantics=("parallel", "parallel"),
            vmem_limit_bytes=vmem_limit,
        ),
    )(x_flat, wm)

    # Undo lane padding: keep first O channels, first W columns of each row.
    # (A consumer tolerating the padded (B, O_pad, H, W_pad) layout can skip
    # this extra HBM pass and/or request out_dtype=bfloat16.)
    out = out_flat[:, :O, :H * W_pad].reshape(B, O, H, W_pad)[:, :, :, :W]
    return out
    # TODO(synk): for very large C*H*W (v7x 64 MiB VMEM) tile x itself with a
    # per-tile (1, C, WIN) windowed fetch (manual double-buffered DMA from a
    # pl.ANY ref) instead of keeping the whole per-batch slab resident.


def mod_conv2d_reference(x, y, weight, *, demod: bool = True):
    """Pure-JAX reference mirroring the PyTorch forward pass."""
    b, c, h, w = x.shape
    O, _, k, _ = weight.shape
    pad = (k - 1) // 2
    wy = y[:, None, :, None, None]
    wo = weight[None, :, :, :, :]
    weights = wo * (wy + 1.0)
    if demod:
        d = jax.lax.rsqrt(
            jnp.sum(weights**2, axis=(2, 3, 4), keepdims=True) + EPS)
        weights = weights * d
    xr = x.reshape(1, b * c, h, w)
    wr = weights.reshape(b * O, c, k, k)
    out = jax.lax.conv_general_dilated(
        xr, wr, window_strides=(1, 1), padding=[(pad, pad), (pad, pad)],
        feature_group_count=b, dimension_numbers=("NCHW", "OIHW", "NCHW"))
    return out.reshape(b, O, h, w)


if __name__ == "__main__":
    B, C, O, K, H, W = 2, 4, 8, 3, 16, 16

    key = jax.random.PRNGKey(0)
    kx, ky, kw = jax.random.split(key, 3)

    x = jax.random.normal(kx, (B, C, H, W), dtype=jnp.float32)
    y = jax.random.normal(ky, (B, C), dtype=jnp.float32)

    # kaiming_normal_(nonlinearity='leaky_relu'): gain = sqrt(2/(1+0.01^2)).
    gain = (2.0 / (1.0 + 0.01**2)) ** 0.5
    std = gain / (C * K * K) ** 0.5
    weight = std * jax.random.normal(kw, (O, C, K, K), dtype=jnp.float32)

    ref = mod_conv2d_reference(x, y, weight, demod=True)

    # Exactness check: f32 compute path.
    out_f32 = jax.block_until_ready(
        mod_conv2d(x, y, weight, demod=True, compute_dtype=jnp.float32))
    assert out_f32.shape == (B, O, H, W), out_f32.shape
    err_f32 = float(jnp.max(jnp.abs(out_f32 - ref)))
    assert err_f32 < 2e-4, err_f32

    # Default fast path: bf16 MXU inputs, f32 modulation/demod/accumulation.
    out_bf16 = jax.block_until_ready(
        mod_conv2d(x, y, weight, demod=True, compute_dtype=jnp.bfloat16))
    assert out_bf16.shape == (B, O, H, W), out_bf16.shape
    err_bf16 = float(jnp.max(jnp.abs(out_bf16 - ref)))
    assert err_bf16 < 1e-1, err_bf16

    print("KERNEL_OK")
</pallas_src>

<mosaic_0001>
module attributes {stable_mosaic.version = 11 : i64} {
  func.func @_modconv_kernel(%arg0: i32, %arg1: i32, %arg2: memref<1x4x512xf32, #tpu.memory_space<vmem>>, %arg3: memref<1x16x36xf32, #tpu.memory_space<vmem>>, %arg4: memref<1x16x384xf32, #tpu.memory_space<vmem>>, %arg5: memref<36x384xf32, #tpu.memory_space<vmem>>) attributes {dimension_semantics = [#tpu.dimension_semantics<parallel>, #tpu.dimension_semantics<parallel>], iteration_bounds = array<i64: 2, 1>, scalar_prefetch = 0 : i64, scratch_operands = 1 : i64, tpu.core_type = #tpu.core_type<tc>, window_params = [{transform_indices = @transform_0, window_bounds = array<i64: 1, 4, 512>}, {transform_indices = @transform_1, window_bounds = array<i64: 1, 16, 36>}, {transform_indices = @transform_2, window_bounds = array<i64: 1, 16, 384>}]} {
    %c384_i32 = arith.constant 384 : i32
    %0 = arith.muli %arg1, %c384_i32 : i32
    %1 = tpu.assume_multiple %0, 128 : i32
    %c0 = arith.constant 0 : index
    %c0_0 = arith.constant 0 : index
    %2 = arith.index_cast %1 : i32 to index
    %3 = vector.load %arg2[%c0, %c0_0, %2] : memref<1x4x512xf32, #tpu.memory_space<vmem>>, vector<1x4x512xf32>
    %4 = vector.shape_cast %3 : vector<1x4x512xf32> to vector<4x512xf32>
    %5 = vector.extract_strided_slice %4 {offsets = [0, 0], sizes = [4, 384], strides = [1, 1]} : vector<4x512xf32> to vector<4x384xf32>
    %c0_1 = arith.constant 0 : index
    %c0_2 = arith.constant 0 : index
    %6 = vector.load %arg5[%c0_1, %c0_2] : memref<36x384xf32, #tpu.memory_space<vmem>>, vector<4x384xf32>
    tpu.vector_store %arg5[%c0_1, %c0_2], %5 {strides = array<i32>} : memref<36x384xf32, #tpu.memory_space<vmem>>, vector<4x384xf32>,
    %c511_i32 = arith.constant 511 : i32
    %7 = tpu.dynamic_rotate %4 by %c511_i32 dim 1 : vector<4x512xf32>, i32 -> vector<4x512xf32>
    %8 = vector.extract_strided_slice %7 {offsets = [0, 0], sizes = [4, 384], strides = [1, 1]} : vector<4x512xf32> to vector<4x384xf32>
    %c4 = arith.constant 4 : index
    %c0_3 = arith.constant 0 : index
    %9 = vector.load %arg5[%c4, %c0_3] : memref<36x384xf32, #tpu.memory_space<vmem>>, vector<4x384xf32>
    tpu.vector_store %arg5[%c4, %c0_3], %8 {strides = array<i32>} : memref<36x384xf32, #tpu.memory_space<vmem>>, vector<4x384xf32>,
    %c510_i32 = arith.constant 510 : i32
    %10 = tpu.dynamic_rotate %4 by %c510_i32 dim 1 : vector<4x512xf32>, i32 -> vector<4x512xf32>
    %11 = vector.extract_strided_slice %10 {offsets = [0, 0], sizes = [4, 384], strides = [1, 1]} : vector<4x512xf32> to vector<4x384xf32>
    %c8 = arith.constant 8 : index
    %c0_4 = arith.constant 0 : index
    %12 = vector.load %arg5[%c8, %c0_4] : memref<36x384xf32, #tpu.memory_space<vmem>>, vector<4x384xf32>
    tpu.vector_store %arg5[%c8, %c0_4], %11 {strides = array<i32>} : memref<36x384xf32, #tpu.memory_space<vmem>>, vector<4x384xf32>,
    %c494_i32 = arith.constant 494 : i32
    %13 = tpu.dynamic_rotate %4 by %c494_i32 dim 1 : vector<4x512xf32>, i32 -> vector<4x512xf32>
    %14 = vector.extract_strided_slice %13 {offsets = [0, 0], sizes = [4, 384], strides = [1, 1]} : vector<4x512xf32> to vector<4x384xf32>
    %c12 = arith.constant 12 : index
    %c0_5 = arith.constant 0 : index
    %15 = vector.load %arg5[%c12, %c0_5] : memref<36x384xf32, #tpu.memory_space<vmem>>, vector<4x384xf32>
    tpu.vector_store %arg5[%c12, %c0_5], %14 {strides = array<i32>} : memref<36x384xf32, #tpu.memory_space<vmem>>, vector<4x384xf32>,
    %c493_i32 = arith.constant 493 : i32
    %16 = tpu.dynamic_rotate %4 by %c493_i32 dim 1 : vector<4x512xf32>, i32 -> vector<4x512xf32>
    %17 = vector.extract_strided_slice %16 {offsets = [0, 0], sizes = [4, 384], strides = [1, 1]} : vector<4x512xf32> to vector<4x384xf32>
    %c16 = arith.constant 16 : index
    %c0_6 = arith.constant 0 : index
    %18 = vector.load %arg5[%c16, %c0_6] : memref<36x384xf32, #tpu.memory_space<vmem>>, vector<4x384xf32>
    tpu.vector_store %arg5[%c16, %c0_6], %17 {strides = array<i32>} : memref<36x384xf32, #tpu.memory_space<vmem>>, vector<4x384xf32>,
    %c492_i32 = arith.constant 492 : i32
    %19 = tpu.dynamic_rotate %4 by %c492_i32 dim 1 : vector<4x512xf32>, i32 -> vector<4x512xf32>
    %20 = vector.extract_strided_slice %19 {offsets = [0, 0], sizes = [4, 384], strides = [1, 1]} : vector<4x512xf32> to vector<4x384xf32>
    %c20 = arith.constant 20 : index
    %c0_7 = arith.constant 0 : index
    %21 = vector.load %arg5[%c20, %c0_7] : memref<36x384xf32, #tpu.memory_space<vmem>>, vector<4x384xf32>
    tpu.vector_store %arg5[%c20, %c0_7], %20 {strides = array<i32>} : memref<36x384xf32, #tpu.memory_space<vmem>>, vector<4x384xf32>,
    %c476_i32 = arith.constant 476 : i32
    %22 = tpu.dynamic_rotate %4 by %c476_i32 dim 1 : vector<4x512xf32>, i32 -> vector<4x512xf32>
    %23 = vector.extract_strided_slice %22 {offsets = [0, 0], sizes = [4, 384], strides = [1, 1]} : vector<4x512xf32> to vector<4x384xf32>
    %c24 = arith.constant 24 : index
    %c0_8 = arith.constant 0 : index
    %24 = vector.load %arg5[%c24, %c0_8] : memref<36x384xf32, #tpu.memory_space<vmem>>, vector<4x384xf32>
    tpu.vector_store %arg5[%c24, %c0_8], %23 {strides = array<i32>} : memref<36x384xf32, #tpu.memory_space<vmem>>, vector<4x384xf32>,
    %c475_i32 = arith.constant 475 : i32
    %25 = tpu.dynamic_rotate %4 by %c475_i32 dim 1 : vector<4x512xf32>, i32 -> vector<4x512xf32>
    %26 = vector.extract_strided_slice %25 {offsets = [0, 0], sizes = [4, 384], strides = [1, 1]} : vector<4x512xf32> to vector<4x384xf32>
    %c28 = arith.constant 28 : index
    %c0_9 = arith.constant 0 : index
    %27 = vector.load %arg5[%c28, %c0_9] : memref<36x384xf32, #tpu.memory_space<vmem>>, vector<4x384xf32>
    tpu.vector_store %arg5[%c28, %c0_9], %26 {strides = array<i32>} : memref<36x384xf32, #tpu.memory_space<vmem>>, vector<4x384xf32>,
    %c474_i32 = arith.constant 474 : i32
    %28 = tpu.dynamic_rotate %4 by %c474_i32 dim 1 : vector<4x512xf32>, i32 -> vector<4x512xf32>
    %29 = vector.extract_strided_slice %28 {offsets = [0, 0], sizes = [4, 384], strides = [1, 1]} : vector<4x512xf32> to vector<4x384xf32>
    %c32 = arith.constant 32 : index
    %c0_10 = arith.constant 0 : index
    %30 = vector.load %arg5[%c32, %c0_10] : memref<36x384xf32, #tpu.memory_space<vmem>>, vector<4x384xf32>
    tpu.vector_store %arg5[%c32, %c0_10], %29 {strides = array<i32>} : memref<36x384xf32, #tpu.memory_space<vmem>>, vector<4x384xf32>,
    %c0_11 = arith.constant 0 : index
    %c0_12 = arith.constant 0 : index
    %c0_13 = arith.constant 0 : index
    %31 = vector.load %arg3[%c0_11, %c0_12, %c0_13] : memref<1x16x36xf32, #tpu.memory_space<vmem>>, vector<1x16x36xf32>
    %32 = vector.shape_cast %31 : vector<1x16x36xf32> to vector<16x36xf32>
    %c0_14 = arith.constant 0 : index
    %c0_15 = arith.constant 0 : index
    %33 = vector.load %arg5[%c0_14, %c0_15] : memref<36x384xf32, #tpu.memory_space<vmem>>, vector<36x384xf32>
    %cst = arith.constant dense<0.000000e+00> : vector<16x384xf32>
    %34 = tpu.matmul %32, %33, %cst {dimension_numbers = #tpu.dot_dimension_numbers<[1], [0], [0], [1], [0, 0, 1, 1], [], []>} : vector<16x36xf32>, vector<36x384xf32>, vector<16x384xf32> -> vector<16x384xf32>
    %c0_16 = arith.constant 0 : index
    %c0_17 = arith.constant 0 : index
    %c0_18 = arith.constant 0 : index
    %35 = vector.load %arg4[%c0_16, %c0_17, %c0_18] : memref<1x16x384xf32, #tpu.memory_space<vmem>>, vector<1x16x384xf32>
    %36 = vector.shape_cast %35 : vector<1x16x384xf32> to vector<16x384xf32>
    %37 = vector.shape_cast %34 : vector<16x384xf32> to vector<1x16x384xf32>
    tpu.vector_store %arg4[%c0_16, %c0_17, %c0_18], %37 {strides = array<i32>} : memref<1x16x384xf32, #tpu.memory_space<vmem>>, vector<1x16x384xf32>,
    return
  }
  func.func @transform_0(%arg0: i32, %arg1: i32) -> (i32, i32, i32) {
    %c0_i32 = arith.constant 0 : i32
    %c0_i32_0 = arith.constant 0 : i32
    %c0_i32_1 = arith.constant 0 : i32
    return %arg0, %c0_i32, %c0_i32_0 : i32, i32, i32
  }
  func.func @transform_1(%arg0: i32, %arg1: i32) -> (i32, i32, i32) {
    %c0_i32 = arith.constant 0 : i32
    %c0_i32_0 = arith.constant 0 : i32
    %c0_i32_1 = arith.constant 0 : i32
    return %arg0, %c0_i32, %c0_i32_0 : i32, i32, i32
  }
  func.func @transform_2(%arg0: i32, %arg1: i32) -> (i32, i32, i32) {
    %c0_i32 = arith.constant 0 : i32
    %c0_i32_0 = arith.constant 0 : i32
    return %arg0, %c0_i32, %arg1 : i32, i32, i32
  }
}

</mosaic_0001>

<bundles_post_ra>
// kernel: tpu_custom_call.1
= control target key start
LH: loop header
LB: loop body
LE: loop exit
PB: predicated region body
PF: predicated region fallthrough
CT: control target
= control target key end

     0   :  { %7 = vsyncpa [#allocation4], 0  ;;  %s1319_s0 = inlined_call_operand.hbm [shape: f32[2,4,512], index: 0, kind: input, shape index: {}]   ;;  %s1320_s1 = inlined_call_operand.hbm [shape: f32[2,16,36], index: 1, kind: input, shape index: {}]   ;;  %s1321_s2 = inlined_call_operand.hbm [shape: f32[2,16,384], index: 2, kind: output, shape index: {}]  }
   0x1   :  { %9 = vsyncpa [#allocation4 + $0x1], 0 }
   0x2   :  { %10 = vsyncpa [#allocation7], 0 }
   0x3   :  { %12 = vsyncpa [#allocation7 + $0x1], 0 }
   0x4   :  { %13 = vsyncpa [#allocation5], 0 }
   0x5   :  { %15 = vsyncpa [#allocation5 + $0x1], 0  ;;  %s1030_s9 = smov 0   ;;  %s1032_s10 = smov 0  }
   0x6   :  { %s1034_s11 = smov 0   ;;  %s1036_s12 = smov 0  }
   0x7   :  { %s1038_s13 = smov 0   ;;  %s1040_s14 = smov 0  }
   0x8 LB: > { %s706_s15 = sadd.s32 4294967295, %s997_s14   ;;  %s707_s16 = sadd.s32 4294967294, %s997_s14   ;;  %s997_s14 = sphi %s1040_s14, %s21_s14   ;;  %s993_s13 = sphi %s1038_s13, %s1338_s13   ;;  %s989_s12 = sphi %s1036_s12, %s1337_s12   ;;  %s985_s11 = sphi %s1034_s11, %s1336_s11   ;;  %s981_s10 = sphi %s1032_s10, %s1335_s10   ;;  %s977_s9 = sphi %s1030_s9, %s1334_s9  }
   0x9   : > { %s33_s17 = sadd.s32 1, %s993_s13  ;;  %s40_s18 = sadd.s32 1, %s985_s11 }
   0xa   : > { %p35_p0 = scmp.ge.s32.totalorder %s33_s17, 2  ;;  %p47_p1 = scmp.ne.s32.totalorder %s985_s11, %s981_s10 }
   0xb   : > { %p48_p2 = scmp.eq.s32.totalorder %s997_s14, 0  ;;  %p53_p3 = scmp.ne.s32.totalorder %s981_s10, %s977_s9 }
   0xc   : > { %s1340_s17 = smov (%p35_p0, %s33_s17), 0  ;;  %p54_p5 = scmp.eq.s32.totalorder %s706_s15, 0 }
   0xd   : > { %p1071_p4 = por %p48_p2, %p47_p1  ;;  %s37_s20 = ssub.s32 %s993_s13, %s1340_s17 }
   0xe   : > { %p105_p6 = scmp.eq.s32.totalorder %s706_s15, 1  ;;  %p38_p7 = scmp.eq.s32.totalorder %s37_s20, 0 }
   0xf   : > { %p1077_p8 = por %p54_p5, %p53_p3  ;;  %p111_p10 = scmp.eq.s32.totalorder %s707_s16, 1 }
  0x10   : > { %p1081_p9 = por %p105_p6, %p47_p1  ;;  %p786_p13 = scmp.lt.s32.totalorder %s997_s14, 2 }
  0x11   : > { %s1325_s21 = scalar_select %p1077_p8, 1, 0 }
  0x12   : > { %s1326_s22 = scalar_select %p1081_p9, 1, 0 }
  0x13   : > { %s1086_s23 = scalar_select %p38_p7, %s985_s11, %s40_s18  }
  0x14   : > { %p1088_p11 = por %p111_p10, %p53_p3  ;;  %s1095_s25 = sand.u32 1, %s985_s11  }
  0x15   : > { %s710_s26 = sshll.u32 %s1095_s25, 4  ;;  %s729_s27 = sshll.u32 %s993_s13, 8 }
  0x16   : > { %s1327_s24 = scalar_select %p1088_p11, 1, 0 }
  0x17   : > { %s1102_s30 = scalar_lea.hbm %s1319_s0, %s729_s27  ;;  %s135_s3 = scalar_lea.vmem [#allocation3], %s710_s26 }
  0x18   : > { %s143_s4 = sshll.u32 %s135_s3, 4  ;;  %p1110_p0 = pnand %p786_p13, %p1071_p4  ;;  %s1106_s4 = int_to_ptr.vmem [resolvable:$true] %s143_s4 }
  0x19   : > { %s1117_s8 = scalar_lea.hbm %s1320_s1, %s729_s27  ;;  %s132_s15 = scalar_lea.sflag [#allocation4], %s1095_s25 }
  0x1a   : > { %s851_s16 = scalar_lea.hbm %s1102_s30, 256  ;;  %p853_p2 = pneg %p1110_p0 }
  0x1b   : > { %p852_p1 = scmp.ne.s32.totalorder %s1102_s30, %s851_s16  ;;  %s856_s20 = scalar_lea.hbm %s1319_s0, 512 }
  0x1c   : > { %p857_p4 = scmp.lt.u32.totalorder %s1102_s30, %s1319_s0  ;;  %p858_p6 = scmp.lt.u32.totalorder %s856_s20, %s851_s16 }
  0x1d   : > { %p854_p3 = pnand %p853_p2, %p852_p1  ;;  %p860_p10 = scmp.lt.u32.totalorder %s851_s16, %s1102_s30 }
  0x1e   : > { %p859_p7 = por %p858_p6, %p857_p4 }
  0x1f   : > { %p855_p5 = pneg %p854_p3 }
  0x20   : > { %p861_p13 = por %p860_p10, %p859_p7 }
  0x22   : > { %p862_p12 = pnand %p861_p13, %p855_p5 }
  0x24   : > { %865 = shalt.err (!%p862_p12)
}
  0x25   : > { %s866_s27 = scalar_lea.vmem %s1106_s4, 256  ;;  %s999_s3 = smov [#allocation3]  }
  0x26   : > { %p867_p1 = scmp.ne.s32.totalorder %s1106_s4, %s866_s27  ;;  %s871_s6 = sshll.u32 %s999_s3, 4  ;;  %s872_s6 = int_to_ptr.vmem [resolvable:$false] %s871_s6 }
  0x27   : > { %s873_s7 = scalar_lea.vmem %s872_s6, 512  ;;  %p874_p9 = scmp.lt.s32.totalorder %s1106_s4, %s872_s6 }
  0x28   : > { %p869_p3 = pnand %p867_p1, %p853_p2  ;;  %p875_p4 = scmp.lt.s32.totalorder %s873_s7, %s866_s27 }
  0x2a   : > { %p870_p11 = pneg %p869_p3  ;;  %p876_p6 = por %p875_p4, %p874_p9 }
  0x2c   : > { %p877_p7 = pnand %p876_p6, %p870_p11 }
  0x2e   : > { %880 = shalt.err (!%p877_p7)
}
  0x2f   : > { %778 = dma.hbm_to_vmem [thread:$0]  (!%p1110_p0), %s1102_s30, 256, %s1106_s4, %s132_s15  }
  0x30   : > { %s154_s16 = scalar_lea.vmem [#allocation6], %s710_s26  ;;  %p716_p9 = scmp.ge.s32.totalorder %s997_s14, 1 }
  0x31   : > { %s161_s18 = sshll.u32 %s154_s16, 4  ;;  %p169_p11 = scmp.lt.s32.totalorder %s997_s14, 3  ;;  %s1148_s18 = int_to_ptr.vmem [resolvable:$true] %s161_s18 }
  0x32   : > { %s151_s20 = scalar_lea.sflag [#allocation7], %s1095_s25  ;;  %s881_s28 = scalar_lea.hbm %s1117_s8, 256 }
  0x33   : > { %p1151_p12 = pnand %p716_p9, %p169_p11  ;;  %p882_p5 = scmp.ne.s32.totalorder %s1117_s8, %s881_s28 }
  0x34   : > { %s886_s26 = scalar_lea.hbm %s1320_s1, 512  ;;  %p887_p1 = scmp.lt.u32.totalorder %s1117_s8, %s1320_s1 }
  0x35   : > { %p884_p10 = pnand %p882_p5, %p853_p2  ;;  %p888_p3 = scmp.lt.u32.totalorder %s886_s26, %s881_s28 }
  0x36   : > { %p890_p6 = scmp.lt.u32.totalorder %s881_s28, %s1117_s8 }
  0x37   : > { %p885_p13 = pneg %p884_p10  ;;  %p889_p4 = por %p888_p3, %p887_p1 }
  0x39   : > { %p891_p7 = por %p890_p6, %p889_p4 }
  0x3b   : > { %p892_p9 = pnand %p891_p7, %p885_p13 }
  0x3d   : > { %895 = shalt.err (!%p892_p9)
}
  0x3e   : > { %s896_s27 = scalar_lea.vmem %s1148_s18, 256  ;;  %s1000_s3 = smov [#allocation6]  }
  0x3f   : > { %p897_p11 = scmp.ne.s32.totalorder %s1148_s18, %s896_s27  ;;  %s901_s6 = sshll.u32 %s1000_s3, 4  ;;  %s902_s6 = int_to_ptr.vmem [resolvable:$false] %s901_s6 }
  0x40   : > { %s903_s7 = scalar_lea.vmem %s902_s6, 512  ;;  %p904_p8 = scmp.lt.s32.totalorder %s1148_s18, %s902_s6 }
  0x41   : > { %p899_p5 = pnand %p897_p11, %p853_p2  ;;  %p905_p1 = scmp.lt.s32.totalorder %s903_s7, %s896_s27 }
  0x43   : > { %p900_p10 = pneg %p899_p5  ;;  %p906_p3 = por %p905_p1, %p904_p8 }
  0x45   : > { %p907_p4 = pnand %p906_p3, %p900_p10 }
  0x47   : > { %910 = shalt.err (!%p907_p4)
}
  0x48   : > { %s1001_s16 = smov 128   ;;  %s1002_s28 = smov 8  }
  0x49   : > { %781 = dma.hbm_to_vmem [thread:$0]  (!%p1110_p0), %s1117_s8, 256, %s1148_s18, %s151_s20, %s1001_s16, %s1001_s16, %s1002_s28  }
  0x4a   : > { %173 = sbr.rel (%p1151_p12) target bundleno = 502 (0x1f6), region = 28  ;;  %s1184_s30 = sand.u32 (!%p1151_p12), 1, %s981_s10  }
  0x4b   : > { %s717_s4 = sshll.u32 (!%p1151_p12), %s1184_s30, 4  ;;  %s176_s26 = scalar_lea.sflag (!%p1151_p12), [#allocation4], %s1184_s30 }
  0x4c   : > { %s179_s15 = scalar_lea.vmem (!%p1151_p12), [#allocation3], %s717_s4  ;;  %p1330_p8 = scmp.ne.s32.totalorder (!%p1151_p12), %s1325_s21, 0 }
  0x51   : > { %964 = dma.done.wait (%p1330_p8), %s176_s26, 256  }
  0x52   : > { %966 = vsyncadd (%p1330_p8), %s176_s26, 4294967040  ;;  %s185_s25 = scalar_lea.sflag [#allocation7], %s1184_s30  ;;  %s1193_s5 = scalar_lea.vmem [#allocation6], %s717_s4 }
  0x53   : > { %968 = dma.done.wait (%p1330_p8), %s185_s25, 256  }
  0x54   : > { %970 = vsyncadd (%p1330_p8), %s185_s25, 4294967040  ;;  %v221_v0 = vld [vmem:[%s179_s15 + $0x8] sm:$0xff]  ;;  %v220_v1 = vld [vmem:[%s179_s15] sm:$0xff]  ;;  %s1003_s8 = smov 110   ;;  %s1004_s18 = smov 127   ;;  %vm406_vm0 = vcmask 293888   ;;  %v239_v6 = vlaneseq }
  0x55   : > { %276 = vrot.lane.b32.xlu1 %v221_v0, %s1003_s8  ;;  %228 = vst [vmem:[#allocation2 + $0x10] sm:$0xf] %v221_v0  ;;  %235 = vrot.lane.b32.xlu0 %v221_v0, %s1004_s18  ;;  %226 = vst [vmem:[#allocation2] sm:$0xf] %v220_v1  ;;  %v224_v2 = vcombine.high %v220_v1, %v220_v1  ;;  %s1005_s19 = smov 126   ;;  %v229_v3 = vcombine.high %v221_v0, %v221_v0  ;;  %s1006_s21 = smov 108  }
  0x56   : > { %s1007_s20 = smov 91   ;;  %s1008_s29 = smov 109   ;;  %v1200_v4 = vld [vmem:[%s1193_s5] sm:$0xff]  ;;  %v1011_v5 = vmov 0.0   ;;  %v1205_v9 = vand.u32 127, %v239_v6  ;;  %vm413_vm9 = vcmask 1043456  }
  0x57   : > { %227 = vst [vmem:[#allocation2 + $0x8] sm:$0xf] %v224_v2  ;;  %s1009_s27 = smov 92   ;;  %s1010_s3 = smov 90   ;;  %487 = vmatprep.mubr.f32.mxu0 %v1011_v5  ;;  %748 = vmatprep.mubr.msk.f32.mxu1 %vm406_vm0, %v1200_v4 }
  0x58   : > { %vm280_vm1 = vcmp.lt.s32.totalorder %v1205_v9, 110  ;;  %vm241_vm2 = vcmp.lt.s32.totalorder %v1205_v9, 127  ;;  %vm265_vm3 = vcmp.lt.s32.totalorder %v1205_v9, 126  ;;  %vm319_vm4 = vcmp.lt.s32.totalorder %v1205_v9, 108  ;;  %s767_s6 = smul.u32 48, %s1184_s30  ;;  %p1331_p2 = scmp.ne.s32.totalorder %s1326_s22, 0 }
  0x59   : > { %272 = vrot.lane.b32.xlu1 %v220_v1, %s1003_s8  ;;  %231 = vrot.lane.b32.xlu0 %v220_v1, %s1004_s18  ;;  %vm358_vm5 = vcmp.lt.s32.totalorder %v1205_v9, 91  ;;  %vm304_vm6 = vcmp.lt.s32.totalorder %v1205_v9, 109  ;;  %vm343_vm7 = vcmp.lt.s32.totalorder %v1205_v9, 92  ;;  %vm382_vm8 = vcmp.lt.s32.totalorder %v1205_v9, 90  ;;  %s768_s28 = smul.u32 768, %s989_s12  ;;  %s582_s12 = scalar_lea.sflag [#allocation5], %s1184_s30 }
  0x5a   : > { %s213_s7 = scalar_lea.vmem [#allocation8], %s767_s6 }
  0x5b   : > { %s597_s16 = sshll.u32 %s213_s7, 4  ;;  %s1270_s15 = scalar_lea.hbm %s1321_s2, %s768_s28  ;;  %s1265_s16 = int_to_ptr.vmem [resolvable:$true] %s597_s16 }
  0x5c   : > { %s911_s25 = scalar_lea.vmem %s1265_s16, 768 }
  0x5d   : > { %274 = vrot.lane.b32.xlu1 %v224_v2, %s1003_s8  ;;  %233 = vrot.lane.b32.xlu0 %v224_v2, %s1004_s18  ;;  %p912_p0 = scmp.ne.s32.totalorder %s1265_s16, %s911_s25 }
  0x5f   : > { %p913_p12 = pnand %p912_p0, %p1331_p2 }
  0x61   : > { %261 = vrot.lane.b32.xlu1 %v221_v0, %s1005_s19  ;;  %259 = vrot.lane.b32.xlu0 %v224_v2, %s1005_s19  ;;  %p914_p13 = pneg %p913_p12 }
  0x65   : > { %237 = vrot.lane.b32.xlu1 %v229_v3, %s1004_s18  ;;  %257 = vrot.lane.b32.xlu0 %v220_v1, %s1005_s19 }
  0x69   : > { %313 = vrot.lane.b32.xlu1 %v224_v2, %s1006_s21  ;;  %278 = vrot.lane.b32.xlu0 %v229_v3, %s1003_s8 }
  0x6d   : > { %352 = vrot.lane.b32.xlu1 %v224_v2, %s1007_s20  ;;  %315 = vrot.lane.b32.xlu0 %v221_v0, %s1006_s21 }
  0x71   : > { %311 = vrot.lane.b32.xlu1 %v220_v1, %s1006_s21  ;;  %354 = vrot.lane.b32.xlu0 %v221_v0, %s1007_s20 }
  0x75   : > { %263 = vrot.lane.b32.xlu1 %v229_v3, %s1005_s19  ;;  %350 = vrot.lane.b32.xlu0 %v220_v1, %s1007_s20 }
  0x79   : > { %300 = vrot.lane.b32.xlu1 %v221_v0, %s1008_s29  ;;  %298 = vrot.lane.b32.xlu0 %v224_v2, %s1008_s29 }
  0x7d   : > { %339 = vrot.lane.b32.xlu1 %v221_v0, %s1009_s27  ;;  %337 = vrot.lane.b32.xlu0 %v224_v2, %s1009_s27 }
  0x81   : > { %335 = vrot.lane.b32.xlu1 %v220_v1, %s1009_s27  ;;  %296 = vrot.lane.b32.xlu0 %v220_v1, %s1008_s29 }
  0x85   : > { %356 = vrot.lane.b32.xlu1 %v229_v3, %s1007_s20  ;;  %317 = vrot.lane.b32.xlu0 %v229_v3, %s1006_s21 }
  0x89   : > { %341 = vrot.lane.b32.xlu1 %v229_v3, %s1009_s27  ;;  %302 = vrot.lane.b32.xlu0 %v229_v3, %s1008_s29 }
  0x8d   : > { %378 = vrot.lane.b32.xlu1 %v221_v0, %s1010_s3  ;;  %376 = vrot.lane.b32.xlu0 %v224_v2, %s1010_s3 }
  0x91   : > { %380 = vrot.lane.b32.xlu1 %v229_v3, %s1010_s3  ;;  %374 = vrot.lane.b32.xlu0 %v220_v1, %s1010_s3 }
  0xc7   : > { %v277_v7 = vpop.permute.xlu1 %276  ;;  %v236_v8 = vpop.permute.xlu0 %235 }
  0xcb   : > { %v273_v10 = vpop.permute.xlu1 %272  ;;  %v232_v11 = vpop.permute.xlu0 %231 }
  0xcf   : > { %v275_v12 = vpop.permute.xlu1 %274  ;;  %v234_v13 = vpop.permute.xlu0 %233 }
  0xd0   : > { %v282_v14 = vsel %vm280_vm1, %v275_v12, %v277_v7  ;;  %v283_v15 = vsel %vm280_vm1, %v273_v10, %v275_v12  ;;  %v243_v16 = vsel %vm241_vm2, %v234_v13, %v236_v8  ;;  %v244_v17 = vsel %vm241_vm2, %v232_v11, %v234_v13 }
  0xd1   : > { %v287_v18 = vrot.slane %v283_v15, 4  ;;  %v288_v19 = vrot.slane %v282_v14, 4  ;;  %v248_v20 = vrot.slane %v244_v17, 4  ;;  %v249_v21 = vrot.slane %v243_v16, 4 }
  0xd3   : > { %293 = vst [vmem:[#allocation2 + $0x18] sm:$0xf0] %v287_v18  ;;  %294 = vst [vmem:[#allocation2 + $0x20] sm:$0xf0] %v288_v19  ;;  %v262_v22 = vpop.permute.xlu1 %261  ;;  %v260_v23 = vpop.permute.xlu0 %259 }
  0xd4   : > { %254 = vst [vmem:[#allocation2] sm:$0xf0] %v248_v20  ;;  %255 = vst [vmem:[#allocation2 + $0x8] sm:$0xf0] %v249_v21  ;;  %v267_v24 = vsel %vm265_vm3, %v260_v23, %v262_v22 }
  0xd5   : > { %270 = vst [vmem:[#allocation2 + $0x20] sm:$0xf] %v267_v24 }
  0xd7   : > { %v238_v25 = vpop.permute.xlu1 %237  ;;  %v258_v26 = vpop.permute.xlu0 %257 }
  0xd8   : > { %v242_v27 = vsel %vm241_vm2, %v236_v8, %v238_v25  ;;  %v268_v28 = vsel %vm265_vm3, %v258_v26, %v260_v23 }
  0xd9   : > { %v250_v29 = vrot.slane %v242_v27, 4  ;;  %269 = vst [vmem:[#allocation2 + $0x18] sm:$0xf] %v268_v28 }
  0xdb   : > { %256 = vst [vmem:[#allocation2 + $0x10] sm:$0xf0] %v250_v29  ;;  %v314_v30 = vpop.permute.xlu1 %313  ;;  %v279_v31 = vpop.permute.xlu0 %278  ;;  %v392_v33 = vld [vmem:[#allocation2 + $0x8] sm:$0xff]  ;;  %v391_v40 = vld [vmem:[#allocation2] sm:$0xff] }
  0xdc   : > { %v281_v32 = vsel %vm280_vm1, %v277_v7, %v279_v31  ;;  %v395_v34 = vld [vmem:[#allocation2 + $0x20] sm:$0xff] }
  0xdd   : > { %v289_v35 = vrot.slane %v281_v32, 4  ;;  %v751_v36 = vpack.c.bf16 %v395_v34, %v392_v33 }
  0xdf   : > { %295 = vst [vmem:[#allocation2 + $0x28] sm:$0xf0] %v289_v35  ;;  %v353_v37 = vpop.permute.xlu1 %352  ;;  %v316_v38 = vpop.permute.xlu0 %315  ;;  %752 = vmatprep.subr.bf16.mxu0 %v751_v36  ;;  %v390_v35 = vld [vmem:[%s1193_s5 + $0x8] sm:$0xff]  ;;  %s1012_s5 = smov [#allocation8]  }
  0xe0   : > { %v321_v39 = vsel %vm319_vm4, %v314_v30, %v316_v38  ;;  %v394_v41 = vld [vmem:[#allocation2 + $0x18] sm:$0xff]  ;;  %s915_s8 = sshll.u32 %s1012_s5, 4  ;;  %s916_s8 = int_to_ptr.vmem [resolvable:$false] %s915_s8 }
  0xe1   : > { %v327_v42 = vrot.slane %v321_v39, 4  ;;  %v753_v43 = vpack.c.bf16 %v394_v41, %v391_v40  ;;  %s917_s18 = scalar_lea.vmem %s916_s8, 1536  ;;  %p918_p6 = scmp.lt.s32.totalorder %s1265_s16, %s916_s8 }
  0xe2   : > { %v393_v61 = vld [vmem:[#allocation2 + $0x10] sm:$0xff]  ;;  %p919_p7 = scmp.lt.s32.totalorder %s917_s18, %s911_s25 }
  0xe3   : > { %333 = vst [vmem:[#allocation2 + $0x38] sm:$0xf0] %v327_v42  ;;  %v312_v44 = vpop.permute.xlu1 %311  ;;  %v355_v45 = vpop.permute.xlu0 %354  ;;  %754 = vmatpush1.bf16.msra.mxu0 %v753_v43 }
  0xe4   : > { %v322_v46 = vsel %vm319_vm4, %v312_v44, %v314_v30  ;;  %v360_v47 = vsel %vm358_vm5, %v353_v37, %v355_v45  ;;  %p920_p9 = por %p919_p7, %p918_p6 }
  0xe5   : > { %v326_v48 = vrot.slane %v322_v46, 4  ;;  %v366_v49 = vrot.slane %v360_v47, 4 }
  0xe6   : > { %p921_p11 = pnand %p920_p9, %p914_p13 }
  0xe7   : > { %332 = vst [vmem:[#allocation2 + $0x30] sm:$0xf0] %v326_v48  ;;  %372 = vst [vmem:[#allocation2 + $0x50] sm:$0xf0] %v366_v49  ;;  %v264_v50 = vpop.permute.xlu1 %263  ;;  %v351_v51 = vpop.permute.xlu0 %350 }
  0xe8   : > { %v266_v52 = vsel %vm265_vm3, %v262_v22, %v264_v50  ;;  %v361_v53 = vsel %vm358_vm5, %v351_v51, %v353_v37 }
  0xe9   : > { %271 = vst [vmem:[#allocation2 + $0x28] sm:$0xf] %v266_v52  ;;  %v365_v54 = vrot.slane %v361_v53, 4 }
  0xeb   : > { %371 = vst [vmem:[#allocation2 + $0x48] sm:$0xf0] %v365_v54  ;;  %v301_v55 = vpop.permute.xlu1 %300  ;;  %v299_v56 = vpop.permute.xlu0 %298 }
  0xec   : > { %v306_v57 = vsel %vm304_vm6, %v299_v56, %v301_v55 }
  0xed   : > { %309 = vst [vmem:[#allocation2 + $0x38] sm:$0xf] %v306_v57 }
  0xef   : > { %v340_v58 = vpop.permute.xlu1 %339  ;;  %v338_v59 = vpop.permute.xlu0 %337 }
  0xf0   : > { %v345_v60 = vsel %vm343_vm7, %v338_v59, %v340_v58  ;;  %v396_v62 = vld [vmem:[#allocation2 + $0x28] sm:$0xff] }
  0xf1   : > { %348 = vst [vmem:[#allocation2 + $0x50] sm:$0xf] %v345_v60  ;;  %v759_v63 = vpack.c.bf16 %v396_v62, %v393_v61 }
  0xf3   : > { %v336_v0 = vpop.permute.xlu1 %335  ;;  %760 = vmatprep.subr.bf16.mxu1 %v759_v63  ;;  %v297_v1 = vpop.permute.xlu0 %296 }
  0xf4   : > { %v346_v2 = vsel %vm343_vm7, %v336_v0, %v338_v59  ;;  %v307_v3 = vsel %vm304_vm6, %v297_v1, %v299_v56  ;;  %762 = vmatpush3.bf16.msra.mxu1 %v759_v63  ;;  %v398_v11 = vld [vmem:[#allocation2 + $0x38] sm:$0xff] }
  0xf5   : > { %347 = vst [vmem:[#allocation2 + $0x48] sm:$0xf] %v346_v2  ;;  %308 = vst [vmem:[#allocation2 + $0x30] sm:$0xf] %v307_v3 }
  0xf7   : > { %v357_v6 = vpop.permute.xlu1 %356  ;;  %v318_v7 = vpop.permute.xlu0 %317 }
  0xf8   : > { %v359_v8 = vsel %vm358_vm5, %v355_v45, %v357_v6  ;;  %v320_v10 = vsel %vm319_vm4, %v316_v38, %v318_v7  ;;  %v401_v12 = vld [vmem:[#allocation2 + $0x50] sm:$0xff] }
  0xf9   : > { %v367_v13 = vrot.slane %v359_v8, 4  ;;  %v328_v14 = vrot.slane %v320_v10, 4  ;;  %v755_v15 = vpack.c.bf16 %v401_v12, %v398_v11 }
  0xfb   : > { %373 = vst [vmem:[#allocation2 + $0x58] sm:$0xf0] %v367_v13  ;;  %334 = vst [vmem:[#allocation2 + $0x40] sm:$0xf0] %v328_v14  ;;  %v342_v16 = vpop.permute.xlu1 %341  ;;  %v303_v17 = vpop.permute.xlu0 %302  ;;  %756 = vmatprep.subr.bf16.mxu0 %v755_v15 }
  0xfc   : > { %v344_v18 = vsel %vm343_vm7, %v340_v58, %v342_v16  ;;  %v305_v19 = vsel %vm304_vm6, %v301_v55, %v303_v17  ;;  %v397_v20 = vld [vmem:[#allocation2 + $0x30] sm:$0xff]  ;;  %v400_v21 = vld [vmem:[#allocation2 + $0x48] sm:$0xff] }
  0xfd   : > { %349 = vst [vmem:[#allocation2 + $0x58] sm:$0xf] %v344_v18  ;;  %310 = vst [vmem:[#allocation2 + $0x40] sm:$0xf] %v305_v19  ;;  %v757_v22 = vpack.c.bf16 %v400_v21, %v397_v20 }
  0xff   : > { %v379_v23 = vpop.permute.xlu1 %378  ;;  %v377_v24 = vpop.permute.xlu0 %376  ;;  %758 = vmatpush1.bf16.msra.mxu0 %v757_v22 }
 0x100   : > { %v384_v25 = vsel %vm382_vm8, %v377_v24, %v379_v23 }
 0x101   : > { %387 = vst [vmem:[#allocation2 + $0x68] sm:$0xf] %v384_v25 }
 0x103   : > { %v381_v26 = vpop.permute.xlu1 %380  ;;  %v375_v27 = vpop.permute.xlu0 %374 }
 0x104   : > { %v383_v28 = vsel %vm382_vm8, %v379_v23, %v381_v26  ;;  %v385_v29 = vsel %vm382_vm8, %v375_v27, %v377_v24  ;;  %v399_v30 = vld [vmem:[#allocation2 + $0x40] sm:$0xff]  ;;  %v402_v31 = vld [vmem:[#allocation2 + $0x58] sm:$0xff] }
 0x105   : > { %388 = vst [vmem:[#allocation2 + $0x70] sm:$0xf] %v383_v28  ;;  %386 = vst [vmem:[#allocation2 + $0x60] sm:$0xf] %v385_v29  ;;  %v763_v32 = vpack.c.bf16 %v402_v31, %v399_v30 }
 0x107   : > { %764 = vmatprep.subr.bf16.mxu1 %v763_v32 }
 0x108   : > { %766 = vmatpush3.bf16.msra.mxu1 %v763_v32  ;;  %v404_v9 = vld [vmem:[#allocation2 + $0x68] sm:$0xf] }
 0x109   : > { %719 = vmatprep.subr.msk.mxu0 %vm413_vm9, %v404_v9 }
 0x10c   : > { %v403_v33 = vld [vmem:[#allocation2 + $0x60] sm:$0xf]  ;;  %v405_v34 = vld [vmem:[#allocation2 + $0x70] sm:$0xf] }
 0x10d   : > { %720 = vmatpush1.msk.msra.mxu0 %vm413_vm9, %v403_v33  ;;  %746 = vmatprep.subr.msk.mxu1 %vm413_vm9, %v405_v34 }
 0x10e   : > { %721 = vmatmul.mubr.msk.f32.vlgmr.msra.gmra.mrb[0].mxu0 %vm406_vm0, %v1200_v4  ;;  %747 = vmatpush3.msk.msra.mxu1 %vm413_vm9, %v405_v34 }
 0x10f   : > { %493 = vmatprep.mubr.f32.mxu0 %v1011_v5  ;;  %749 = vmatmul.mubr.msk.f32.vlgmr.msra.gmra.mrb[0].mxu1 %vm406_vm0, %v390_v35 }
 0x112   : > { %722 = vmatmul.mubr.msk.f32.gmra.mrb[2].mxu0 %vm406_vm0, %v390_v35 }
 0x1e1   : > { %v489_v36 = vpop.f32.mrb[0].mxu0 }
 0x1e2   : > { %575 = vst [vmem:[%s213_s7] sm:$0xff] %v489_v36  ;;  %v491_v37 = vpop.f32.mrb[1].mxu0  ;;  %v750_v38 = vpop.f32.mrb[0].mxu1 }
 0x1e3   : > { %576 = vst [vmem:[%s213_s7 + $0x8] sm:$0xff] %v491_v37  ;;  %580 = vst [vmem:[%s213_s7 + $0x28] sm:$0xff] %v750_v38  ;;  %v566_v4 = vpop.f32.mrb[1].mxu1 }
 0x1e4   : > { %577 = vst [vmem:[%s213_s7 + $0x10] sm:$0xff] %v566_v4 }
 0x1e5   : > { %v495_v5 = vpop.f32.mrb[2].mxu0 }
 0x1e6   : > { %578 = vst [vmem:[%s213_s7 + $0x18] sm:$0xff] %v495_v5  ;;  %v497_v39 = vpop.f32.mrb[3].mxu0 }
 0x1e7   : > { %579 = vst [vmem:[%s213_s7 + $0x20] sm:$0xff] %v497_v39 }
 0x1e8   : > { %924 = shalt.err (!%p921_p11)
}
 0x1e9   : > { %s925_s19 = scalar_lea.hbm %s1270_s15, 768  ;;  %s929_s29 = scalar_lea.hbm %s1321_s2, 1536 }
 0x1ea   : > { %p926_p5 = scmp.ne.s32.totalorder %s1270_s15, %s925_s19  ;;  %p930_p3 = scmp.lt.u32.totalorder %s1270_s15, %s1321_s2 }
 0x1eb   : > { %p931_p4 = scmp.lt.u32.totalorder %s929_s29, %s925_s19  ;;  %p933_p0 = scmp.lt.u32.totalorder %s925_s19, %s1270_s15 }
 0x1ec   : > { %p927_p10 = pnand %p926_p5, %p1331_p2 }
 0x1ed   : > { %p932_p8 = por %p931_p4, %p930_p3 }
 0x1ee   : > { %p928_p1 = pneg %p927_p10 }
 0x1ef   : > { %p934_p12 = por %p933_p0, %p932_p8 }
 0x1f1   : > { %p935_p13 = pnand %p934_p12, %p928_p1 }
 0x1f3   : > { %938 = shalt.err (!%p935_p13)
}
 0x1f4   : > { %s1013_s6 = smov 384   ;;  %s1014_s7 = smov 24  }
 0x1f5   : > { %773 = dma.vmem_to_hbm [thread:$0]  (%p1331_p2), %s1265_s16, 768, %s1270_s15, %s582_s12, %s1013_s6, %s1013_s6, %s1014_s7  }
 0x1f6 PF: > { %s612_s28 = sand.u32 1, %s977_s9   ;;  %p1332_p6 = scmp.ne.s32.totalorder %s1327_s24, 0 }
 0x1f7   : > { %p1333_p7 = scmp.ge.s32.totalorder %s997_s14, 2  ;;  %s613_s4 = scalar_lea.sflag [#allocation5], %s612_s28 }
 0x1f9   : > { %p783_p9 = pnand %p1333_p7, %p1332_p6 }
 0x1fb   : > { %972 = dma.done.wait (!%p783_p9), %s613_s4, 768  }
 0x1fc   : > { %974 = vsyncadd (!%p783_p9), %s613_s4, 4294966528  ;;  %s21_s14 = sadd.s32 1, %s997_s14   ;;  %s1334_s9 = smov %s981_s10 }
 0x1fd   : > { %p18_p11 = scmp.ge.s32.totalorder %s21_s14, 4   ;;  %s1335_s10 = smov %s985_s11 }
 0x1fe   : > { %s1336_s11 = smov %s1086_s23  ;;  %s1337_s12 = smov %s993_s13 }
 0x1ff   : > { %s1338_s13 = smov %s1340_s17  ;;  %20 = sbr.rel (!%p18_p11) target bundleno = 8 (0x8), region = 87 }
 0x206   :  { %618 = vsyncpa [#allocation4], 1 }
 0x207   :  { %620 = vsyncpa [#allocation4 + $0x1], 1 }
 0x208   :  { %621 = vsyncpa [#allocation7], 1 }
 0x209   :  { %623 = vsyncpa [#allocation7 + $0x1], 1 }
 0x20a   :  { %624 = vsyncpa [#allocation5], 1 }
 0x20b   :  { %626 = vsyncpa [#allocation5 + $0x1], 1 }

</bundles_post_ra>
